<compile_context>
chip_gen: v5e
topology: v5e:2x2
jax: 0.10.0
libtpu: 0.0.40
codegen_flags: <defaults>
</compile_context>

<pallas_src>
import math
import jax
import jax.numpy as jnp
from jax.experimental import pallas as pl
from jax.experimental.pallas import tpu as pltpu


# ---------------------------------------------------------------------------
# PE table (replicates the PyTorch registered buffer)
# ---------------------------------------------------------------------------
def make_pe_table(pos_len: int, d_model: int) -> jnp.ndarray:
    """Returns pe of shape (d_model, pos_len), matching the PyTorch buffer."""
    assert d_model % 2 == 0, "d_model must be even (matches the PyTorch module)"
    pos = jnp.arange(pos_len, dtype=jnp.float32)[:, None]               # (L, 1)
    div_term = jnp.exp(
        jnp.arange(0, d_model, 2, dtype=jnp.float32)
        * (-math.log(10000.0) / d_model)
    )                                                                    # (D/2,)
    angles = pos * div_term                                              # (L, D/2)
    sin = 0.1 * jnp.sin(angles)
    cos = 0.1 * jnp.cos(angles)
    # interleave: pe[:, 0::2] = sin, pe[:, 1::2] = cos
    pe = jnp.stack([sin, cos], axis=-1).reshape(pos_len, d_model)        # (L, D)
    return pe.T                                                          # (D, L)


# ---------------------------------------------------------------------------
# Kernels: plain full-width vadd (HBM-bandwidth bound)
# ---------------------------------------------------------------------------
def _add_pe_3d_kernel(x_ref, pe_ref, o_ref):
    # x/o: (bn, C, bl) ; pe: (C, bl) -> broadcast over the leading batch dim
    o_ref[...] = x_ref[...] + pe_ref[...][None, :, :]


def _add_pe_2d_kernel(x_ref, pe_ref, o_ref):
    # x/o: (bn, bm) ; pe: (1, bm) -> sublane broadcast
    o_ref[...] = x_ref[...] + pe_ref[...]


# ---------------------------------------------------------------------------
# Block sizing (~1 MiB tiles: >=85% HBM roofline, fits every generation's
# default scoped VMEM with double buffering; guarantee >=2 grid steps on big
# problems so v7x megacore has work on both TensorCores)
# ---------------------------------------------------------------------------
_TARGET_BYTES = 1 << 20


def _pick_blocks_3d(N, C, L, itemsize, target_bytes=_TARGET_BYTES):
    row_bytes = max(1, C * itemsize)
    if L <= 128 or L * row_bytes <= target_bytes:
        bl = L                                            # full lane extent
    else:
        bl = (target_bytes // (row_bytes * 128)) * 128
        bl = int(max(128, min(bl, (L // 128) * 128)))     # multiple of 128
    bn = int(max(1, min(N, target_bytes // max(1, row_bytes * bl))))
    # v7x: if the problem is non-trivial, make sure both TCs get a grid step.
    total_bytes = N * C * L * itemsize
    if total_bytes > (1 << 20) and pl.cdiv(N, bn) * pl.cdiv(L, bl) < 2 and N >= 2:
        bn = pl.cdiv(N, 2)
    return bn, int(bl)


def _pick_blocks_2d(N, M, itemsize, target_bytes=_TARGET_BYTES):
    if M <= 128 or M * itemsize <= target_bytes:
        bm = M
    else:
        bm = (target_bytes // (itemsize * 128)) * 128
        bm = int(max(128, min(bm, (M // 128) * 128)))
    max_bn = target_bytes // max(1, bm * itemsize)
    if max_bn >= N:
        bn = N                                            # full dim -> allowed
    elif max_bn >= 8:
        bn = int((max_bn // 8) * 8)                       # sublane multiple of 8
    else:
        bn = N
    total_bytes = N * M * itemsize
    if total_bytes > (1 << 20) and pl.cdiv(N, bn) * pl.cdiv(M, bm) < 2:
        if N >= 16:
            bn = int(((pl.cdiv(N, 2) + 7) // 8) * 8)
        elif M >= 256:
            bm = int(max(128, ((pl.cdiv(M, 2) + 127) // 128) * 128))
    return int(bn), int(bm)


# ---------------------------------------------------------------------------
# pallas_call wrappers
# ---------------------------------------------------------------------------
def _add_pe_3d(x2, pe_slab):
    N, C, L = x2.shape
    itemsize = jnp.dtype(x2.dtype).itemsize
    bn, bl = _pick_blocks_3d(N, C, L, itemsize)
    # Lane axis OUTER, batch axis INNER: pe's block index (0, j) is constant
    # across consecutive (inner) batch steps -> fetched once per lane block.
    grid = (pl.cdiv(L, bl), pl.cdiv(N, bn))
    cost = pl.CostEstimate(
        flops=int(N * C * L),
        transcendentals=0,
        bytes_accessed=int((2 * N * C * L + C * L) * itemsize),
    )
    return pl.pallas_call(
        _add_pe_3d_kernel,
        out_shape=jax.ShapeDtypeStruct((N, C, L), x2.dtype),
        grid_spec=pltpu.PrefetchScalarGridSpec(
            num_scalar_prefetch=0,
            grid=grid,
            in_specs=[
                pl.BlockSpec((bn, C, bl), lambda j, i: (i, 0, j)),
                pl.BlockSpec((C, bl), lambda j, i: (0, j)),   # constant over inner axis
            ],
            out_specs=pl.BlockSpec((bn, C, bl), lambda j, i: (i, 0, j)),
        ),
        compiler_params=pltpu.CompilerParams(
            dimension_semantics=("parallel", "parallel"),
        ),
        cost_estimate=cost,
    )(x2, pe_slab)


def _add_pe_2d(x2, pe_slab):
    N, M = x2.shape
    itemsize = jnp.dtype(x2.dtype).itemsize
    bn, bm = _pick_blocks_2d(N, M, itemsize)
    grid = (pl.cdiv(M, bm), pl.cdiv(N, bn))   # lane outer, batch inner
    cost = pl.CostEstimate(
        flops=int(N * M),
        transcendentals=0,
        bytes_accessed=int((2 * N * M + M) * itemsize),
    )
    return pl.pallas_call(
        _add_pe_2d_kernel,
        out_shape=jax.ShapeDtypeStruct((N, M), x2.dtype),
        grid_spec=pltpu.PrefetchScalarGridSpec(
            num_scalar_prefetch=0,
            grid=grid,
            in_specs=[
                pl.BlockSpec((bn, bm), lambda j, i: (i, j)),
                pl.BlockSpec((1, bm), lambda j, i: (0, j)),
            ],
            out_specs=pl.BlockSpec((bn, bm), lambda j, i: (i, j)),
        ),
        compiler_params=pltpu.CompilerParams(
            dimension_semantics=("parallel", "parallel"),
        ),
        cost_estimate=cost,
    )(x2, pe_slab)


# ---------------------------------------------------------------------------
# Module-like wrapper with cached PE slab (the "registered buffer")
# ---------------------------------------------------------------------------
class PallasPositionalEncoding:
    def __init__(self, pos_len, d_model=512, pe_type='t', dropout=0.0):
        assert pe_type in ('t', 'f')
        self.pe_type = pe_type
        self.dropout = dropout                 # p=0.0 -> identity
        self.pe = make_pe_table(pos_len, d_model)   # (d_model, pos_len)
        self._slab_cache = {}

    def _build_slab(self, x_shape, dtype):
        C_pe, pos_len = self.pe.shape
        if len(x_shape) == 3:
            N, C, T = x_shape
            assert C == C_pe, f"channel mismatch: x has {C}, pe has {C_pe}"
            assert T <= pos_len, f"T={T} exceeds pos_len={pos_len}"
            L = T
            slab = self.pe[:, :T].astype(dtype)                              # (C, T)
        elif len(x_shape) == 4:
            N, C, T, F = x_shape
            assert C == C_pe, f"channel mismatch: x has {C}, pe has {C_pe}"
            L = T * F
            if self.pe_type == 't':
                assert T <= pos_len, f"T={T} exceeds pos_len={pos_len}"
                # slab[c, t*F + f] = pe[c, t]   (broadcast over F)
                slab = jnp.broadcast_to(self.pe[:, :T, None], (C, T, F)).reshape(C, L)
            else:  # 'f'
                assert F <= pos_len, f"F={F} exceeds pos_len={pos_len}"
                # slab[c, t*F + f] = pe[c, f]   (tiled over T)
                slab = jnp.broadcast_to(self.pe[:, None, :F], (C, T, F)).reshape(C, L)
            slab = slab.astype(dtype)
        else:
            raise ValueError("x must be 3-D (N,C,T) or 4-D (N,C,T,F)")

        if L < 128:
            # Collapse (C, L) into a single lane axis -> output lane width is a
            # multiple of 128 (unmasked full-width stores).
            slab = slab.reshape(1, slab.shape[0] * L)
            layout = "2d"
        else:
            layout = "3d"
        return jax.block_until_ready(slab), layout

    def _get_slab(self, x_shape, dtype):
        key = (tuple(x_shape[1:]), jnp.dtype(dtype).name, self.pe_type)
        entry = self._slab_cache.get(key)
        if entry is None:
            entry = self._build_slab(x_shape, dtype)
            self._slab_cache[key] = entry
        return entry

    def __call__(self, x):
        orig_shape = x.shape
        slab, layout = self._get_slab(x.shape, x.dtype)
        if layout == "3d":
            N, C = x.shape[0], x.shape[1]
            L = slab.shape[1]
            out = _add_pe_3d(x.reshape(N, C, L), slab)
        else:
            N = x.shape[0]
            M = slab.shape[1]
            out = _add_pe_2d(x.reshape(N, M), slab)
        # dropout p=0.0 -> identity
        return out.reshape(orig_shape)


if __name__ == "__main__":
    key = jax.random.PRNGKey(0)

    pos_len = 100
    d_model = 32                                   # channels / feature maps

    # 4-D input, NCHW: (batch=2, channels=d_model, time=16, freq=16)
    x = jax.random.normal(key, (2, d_model, 16, 16), dtype=jnp.float32)

    mod_t = PallasPositionalEncoding(pos_len, d_model, pe_type='t')
    mod_f = PallasPositionalEncoding(pos_len, d_model, pe_type='f')
    pe = mod_t.pe                                   # (d_model, pos_len)

    ref_t = x + pe[:, :x.shape[2]][None, :, :, None]
    ref_f = x + pe[:, :x.shape[3]][None, :, None, :]

    out_t = jax.block_until_ready(mod_t(x))
    assert jnp.allclose(out_t, ref_t, atol=1e-6), "mismatch for pe_type='t'"

    out_f = jax.block_until_ready(mod_f(x))
    assert jnp.allclose(out_f, ref_f, atol=1e-6), "mismatch for pe_type='f'"

    # 3-D input (N, C, T) with T < 128 -> exercises the lane-collapsed path.
    x3 = jax.random.normal(jax.random.PRNGKey(1), (2, d_model, 64), dtype=jnp.float32)
    ref_3 = x3 + pe[:, :x3.shape[2]][None, :, :]
    out_3 = jax.block_until_ready(mod_t(x3))
    assert jnp.allclose(out_3, ref_3, atol=1e-6), "mismatch for 3-D input"

    # Second call on the same shape uses the cached PE slab (no re-materialize).
    out_t2 = jax.block_until_ready(mod_t(x))
    assert jnp.allclose(out_t2, ref_t, atol=1e-6), "mismatch on cached-slab call"

    print("KERNEL_OK")
</pallas_src>

<mosaic_0001>
module attributes {stable_mosaic.version = 11 : i64} {
  func.func @_add_pe_3d_kernel(%arg0: i32, %arg1: i32, %arg2: memref<2x32x256xf32, #tpu.memory_space<vmem>>, %arg3: memref<32x256xf32, #tpu.memory_space<vmem>>, %arg4: memref<2x32x256xf32, #tpu.memory_space<vmem>>) attributes {dimension_semantics = [#tpu.dimension_semantics<parallel>, #tpu.dimension_semantics<parallel>], iteration_bounds = array<i64: 1, 1>, scalar_prefetch = 0 : i64, scratch_operands = 0 : i64, tpu.core_type = #tpu.core_type<tc>, window_params = [{transform_indices = @transform_0, window_bounds = array<i64: 2, 32, 256>}, {transform_indices = @transform_1, window_bounds = array<i64: 32, 256>}, {transform_indices = @transform_2, window_bounds = array<i64: 2, 32, 256>}]} {
    %c0 = arith.constant 0 : index
    %c0_0 = arith.constant 0 : index
    %c0_1 = arith.constant 0 : index
    %0 = vector.load %arg2[%c0, %c0_0, %c0_1] : memref<2x32x256xf32, #tpu.memory_space<vmem>>, vector<2x32x256xf32>
    %c0_2 = arith.constant 0 : index
    %c0_3 = arith.constant 0 : index
    %1 = vector.load %arg3[%c0_2, %c0_3] : memref<32x256xf32, #tpu.memory_space<vmem>>, vector<32x256xf32>
    %2 = vector.shape_cast %1 : vector<32x256xf32> to vector<1x32x256xf32>
    %3 = vector.broadcast %2 : vector<1x32x256xf32> to vector<2x32x256xf32>
    %4 = arith.addf %0, %3 : vector<2x32x256xf32>
    %c0_4 = arith.constant 0 : index
    %c0_5 = arith.constant 0 : index
    %c0_6 = arith.constant 0 : index
    %5 = vector.load %arg4[%c0_4, %c0_5, %c0_6] : memref<2x32x256xf32, #tpu.memory_space<vmem>>, vector<2x32x256xf32>
    tpu.vector_store %arg4[%c0_4, %c0_5, %c0_6], %4 {strides = array<i32>} : memref<2x32x256xf32, #tpu.memory_space<vmem>>, vector<2x32x256xf32>,
    return
  }
  func.func @transform_0(%arg0: i32, %arg1: i32) -> (i32, i32, i32) {
    %c0_i32 = arith.constant 0 : i32
    %c0_i32_0 = arith.constant 0 : i32
    return %arg1, %c0_i32, %arg0 : i32, i32, i32
  }
  func.func @transform_1(%arg0: i32, %arg1: i32) -> (i32, i32) {
    %c0_i32 = arith.constant 0 : i32
    %c0_i32_0 = arith.constant 0 : i32
    return %c0_i32, %arg0 : i32, i32
  }
  func.func @transform_2(%arg0: i32, %arg1: i32) -> (i32, i32, i32) {
    %c0_i32 = arith.constant 0 : i32
    %c0_i32_0 = arith.constant 0 : i32
    return %arg1, %c0_i32, %arg0 : i32, i32, i32
  }
}

</mosaic_0001>

<bundles_post_ra>
// kernel: tpu_custom_call.1
= control target key start
LH: loop header
LB: loop body
LE: loop exit
PB: predicated region body
PF: predicated region fallthrough
CT: control target
= control target key end

     0   :  { %7 = vsyncpa [#allocation3], 0  ;;  %s241_s0 = inlined_call_operand.hbm [shape: f32[2,32,256], index: 0, kind: input, shape index: {}]   ;;  %s242_s1 = inlined_call_operand.hbm [shape: f32[32,256], index: 1, kind: input, shape index: {}]   ;;  %s243_s2 = inlined_call_operand.hbm [shape: f32[2,32,256], index: 2, kind: output, shape index: {}]  }
   0x1   :  { %8 = vsyncpa [#allocation6], 0 }
   0x2   :  { %9 = vsyncpa [#allocation4], 0  ;;  %s14_s11 = sshll.u32 %s241_s0, 4  ;;  %s203_s12 = smov [#allocation2]   ;;  %s15_s11 = int_to_ptr.hbm [resolvable:$true] %s14_s11 }
   0x3   :  { %s16_s13 = sshll.u32 %s203_s12, 4  ;;  %s27_s16 = sshll.u32 %s242_s1, 4  ;;  %s17_s13 = int_to_ptr.vmem [resolvable:$true] %s16_s13  ;;  %s28_s16 = int_to_ptr.hbm [resolvable:$true] %s27_s16 }
   0x4   :  { %s204_s17 = smov 256   ;;  %s205_s18 = smov 16  }
   0x5   :  { %22 = dma.hbm_to_vmem [thread:$0]  %s15_s11, 2048, %s17_s13, [#allocation3], %s204_s17, %s204_s17, %s205_s18  }
   0x6   :  { %s206_s19 = smov [#allocation5]  }
   0x7   :  { %s29_s20 = sshll.u32 %s206_s19, 4  ;;  %s30_s20 = int_to_ptr.vmem [resolvable:$true] %s29_s20 }
   0x8   :  { %35 = dma.hbm_to_vmem [thread:$0]  %s28_s16, 1024, %s30_s20, [#allocation6], %s204_s17, %s204_s17, %s205_s18  }
   0x9   :  { %197 = dma.done.wait [#allocation3], 2048  }
   0xa   :  { %198 = vsyncadd [#allocation3], 4294965248 }
   0xb   :  { %199 = dma.done.wait [#allocation6], 1024  }
   0xc   :  { %200 = vsyncadd [#allocation6], 4294966272  ;;  %v44_v0 = vld [vmem:[#allocation2] sm:$0xff]  ;;  %v45_v2 = vld [vmem:[#allocation2 + $0x8] sm:$0xff]  ;;  %s207_s0 = smov [#allocation7]   ;;  %s106_s23 = sshll.u32 %s243_s2, 4  ;;  %s107_s23 = int_to_ptr.hbm [resolvable:$true] %s106_s23 }
   0xd   :  { %v60_v1 = vld [vmem:[#allocation5] sm:$0xff]  ;;  %v61_v4 = vld [vmem:[#allocation5 + $0x8] sm:$0xff]  ;;  %v46_v5 = vld [vmem:[#allocation2 + $0x10] sm:$0xff]  ;;  %s104_s1 = sshll.u32 %s207_s0, 4  ;;  %s105_s1 = int_to_ptr.vmem [resolvable:$true] %s104_s1 }
   0xe   :  { %v68_v3 = vadd.f32 %v60_v1, %v44_v0  ;;  %v62_v6 = vld [vmem:[#allocation5 + $0x10] sm:$0xff]  ;;  %v69_v7 = vadd.f32 %v61_v4, %v45_v2  ;;  %v47_v9 = vld [vmem:[#allocation2 + $0x18] sm:$0xff]  ;;  %v48_v11 = vld [vmem:[#allocation2 + $0x20] sm:$0xff] }
   0xf   :  { %v70_v8 = vadd.f32 %v62_v6, %v46_v5  ;;  %v63_v10 = vld [vmem:[#allocation5 + $0x18] sm:$0xff]  ;;  %v64_v13 = vld [vmem:[#allocation5 + $0x20] sm:$0xff]  ;;  %v49_v14 = vld [vmem:[#allocation2 + $0x28] sm:$0xff] }
  0x10   :  { %84 = vst [vmem:[#allocation7] sm:$0xff] %v68_v3  ;;  %v71_v12 = vadd.f32 %v63_v10, %v47_v9  ;;  %v65_v15 = vld [vmem:[#allocation5 + $0x28] sm:$0xff]  ;;  %v72_v16 = vadd.f32 %v64_v13, %v48_v11  ;;  %v50_v18 = vld [vmem:[#allocation2 + $0x30] sm:$0xff]  ;;  %v51_v20 = vld [vmem:[#allocation2 + $0x38] sm:$0xff] }
  0x11   :  { %85 = vst [vmem:[#allocation7 + $0x8] sm:$0xff] %v69_v7  ;;  %v73_v17 = vadd.f32 %v65_v15, %v49_v14  ;;  %v66_v19 = vld [vmem:[#allocation5 + $0x30] sm:$0xff]  ;;  %v67_v22 = vld [vmem:[#allocation5 + $0x38] sm:$0xff]  ;;  %v52_v23 = vld [vmem:[#allocation2 + $0x40] sm:$0xff] }
  0x12   :  { %86 = vst [vmem:[#allocation7 + $0x10] sm:$0xff] %v70_v8  ;;  %v74_v21 = vadd.f32 %v66_v19, %v50_v18  ;;  %v53_v24 = vld [vmem:[#allocation2 + $0x48] sm:$0xff]  ;;  %v75_v25 = vadd.f32 %v67_v22, %v51_v20  ;;  %v54_v26 = vld [vmem:[#allocation2 + $0x50] sm:$0xff]  ;;  %v76_v27 = vadd.f32 %v60_v1, %v52_v23  ;;  %v55_v28 = vld [vmem:[#allocation2 + $0x58] sm:$0xff] }
  0x13   :  { %87 = vst [vmem:[#allocation7 + $0x18] sm:$0xff] %v71_v12  ;;  %v77_v29 = vadd.f32 %v61_v4, %v53_v24  ;;  %v56_v30 = vld [vmem:[#allocation2 + $0x60] sm:$0xff]  ;;  %v78_v31 = vadd.f32 %v62_v6, %v54_v26  ;;  %v57_v32 = vld [vmem:[#allocation2 + $0x68] sm:$0xff]  ;;  %v79_v33 = vadd.f32 %v63_v10, %v55_v28  ;;  %v58_v34 = vld [vmem:[#allocation2 + $0x70] sm:$0xff] }
  0x14   :  { %88 = vst [vmem:[#allocation7 + $0x20] sm:$0xff] %v72_v16  ;;  %v80_v35 = vadd.f32 %v64_v13, %v56_v30  ;;  %v59_v36 = vld [vmem:[#allocation2 + $0x78] sm:$0xff]  ;;  %v81_v37 = vadd.f32 %v65_v15, %v57_v32  ;;  %v82_v38 = vadd.f32 %v66_v19, %v58_v34 }
  0x15   :  { %89 = vst [vmem:[#allocation7 + $0x28] sm:$0xff] %v73_v17  ;;  %v83_v39 = vadd.f32 %v67_v22, %v59_v36 }
  0x16   :  { %90 = vst [vmem:[#allocation7 + $0x30] sm:$0xff] %v74_v21 }
  0x17   :  { %91 = vst [vmem:[#allocation7 + $0x38] sm:$0xff] %v75_v25 }
  0x18   :  { %92 = vst [vmem:[#allocation7 + $0x40] sm:$0xff] %v76_v27 }
  0x19   :  { %93 = vst [vmem:[#allocation7 + $0x48] sm:$0xff] %v77_v29 }
  0x1a   :  { %94 = vst [vmem:[#allocation7 + $0x50] sm:$0xff] %v78_v31 }
  0x1b   :  { %95 = vst [vmem:[#allocation7 + $0x58] sm:$0xff] %v79_v33 }
  0x1c   :  { %96 = vst [vmem:[#allocation7 + $0x60] sm:$0xff] %v80_v35 }
  0x1d   :  { %97 = vst [vmem:[#allocation7 + $0x68] sm:$0xff] %v81_v37 }
  0x1e   :  { %98 = vst [vmem:[#allocation7 + $0x70] sm:$0xff] %v82_v38 }
  0x1f   :  { %99 = vst [vmem:[#allocation7 + $0x78] sm:$0xff] %v83_v39 }
  0x20   :  { %112 = dma.vmem_to_hbm [thread:$0]  %s105_s1, 2048, %s107_s23, [#allocation4], %s204_s17, %s204_s17, %s205_s18  }
  0x21   :  { %201 = dma.done.wait [#allocation4], 2048  }
  0x22   :  { %202 = vsyncadd [#allocation4], 4294965248 }
  0x23   :  { %117 = vsyncpa [#allocation3], 1 }
  0x24   :  { %118 = vsyncpa [#allocation6], 1 }
  0x25   :  { %119 = vsyncpa [#allocation4], 1 }

</bundles_post_ra>
